<compile_context>
chip_gen: v5e
topology: v5e:2x2
jax: 0.10.0
libtpu: 0.0.40
codegen_flags: <defaults>
</compile_context>

<pallas_src>
import functools

import jax
import jax.numpy as jnp
from jax.experimental import pallas as pl
from jax.experimental.pallas import tpu as pltpu


def _round_up(x, m):
    return ((x + m - 1) // m) * m


def _margin_linear_kernel(x_ref, w_ref, o_ref, *, s):
    # x_ref: (tm, E)  embeddings tile (full embedding dim)
    # w_ref: (E, tn)  raw kernel columns tile (full embedding dim)
    # o_ref: (tm, tn) output tile
    w = w_ref[...]
    wf = w.astype(jnp.float32)
    # Column L2-norm fused in-kernel: VPU square-sum + one EUP rsqrt over tn
    # lanes; hides under the MXU matmul and avoids an extra HBM pass over the
    # weight matrix. rsqrt(0) -> inf -> NaN matches PyTorch's 0/0 = NaN for
    # zero-norm columns.
    inv_norm = jax.lax.rsqrt(jnp.sum(wf * wf, axis=0, keepdims=True))  # (1, tn)

    cos_theta = jnp.dot(x_ref[...], w, preferred_element_type=jnp.float32)
    # Normalize the (tm, tn) result instead of the (E, tn) weights.
    cos_theta = cos_theta * inv_norm
    cos_theta = jnp.clip(cos_theta, -1.0, 1.0)
    o_ref[...] = (cos_theta * s).astype(o_ref.dtype)


def margin_linear(embeddings, kernel, *, s=64.0, tm=128, tn=512,
                  compute_dtype=None):
    """Pallas forward of MagrginLinear.forward.

    embeddings: [B, E] float32
    kernel:     [E, C] float32 (unnormalized; column-normalized in forward)
    returns:    [B, C] float32 == clamp(emb @ l2_norm(kernel, axis=0), -1, 1) * s
    """
    B, E = embeddings.shape
    E2, C = kernel.shape
    assert E == E2

    x = embeddings
    w = kernel
    if compute_dtype is not None:
        # Numerics-affecting vs. the f32 PyTorch reference; accumulation and
        # the norm/clip/scale epilogue stay in f32.
        x = x.astype(compute_dtype)
        w = w.astype(compute_dtype)
    x_isz = jnp.dtype(x.dtype).itemsize
    w_isz = jnp.dtype(w.dtype).itemsize

    # --- Tile selection (no padding copies). ---
    # Batch rows: clamp to the real batch. A full-dim block (tm == B) is legal
    # for any B; otherwise tm stays a multiple of 8/16 and the ragged last tile
    # is handled by Pallas masked edge writes.
    sub = 8 if x_isz == 4 else 16
    if B <= tm:
        tm = B                      # full-dim block, legal for any B
    else:
        tm = (tm // sub) * sub

    # Class columns: full-dim block when C fits in one tile (legal for any C),
    # otherwise a 128-multiple tile with a ragged last tile.
    if C <= tn:
        tn = C
        tn_shrinkable = False
    else:
        tn = (tn // 128) * 128
        tn_shrinkable = True

    # Keep the double-buffered footprint under ~40 MiB (safe on v7x's 64 MiB
    # physical VMEM; tiny fraction of v5e/v6e's 128 MiB).
    def footprint(tm_, tn_):
        return 2 * (tm_ * E * x_isz + E * tn_ * w_isz + tm_ * tn_ * 4)

    budget = 40 * 1024 * 1024
    while tn_shrinkable and tn > 128 and footprint(tm, tn) > budget:
        tn = max(128, _round_up(tn // 2, 128))

    grid_c = pl.cdiv(C, tn)
    grid_b = pl.cdiv(B, tm)
    # Weight tiles on the *outer* (slow) axis, batch tiles inner: the (E, tn)
    # weight block index is constant across the inner loop, so the dominant
    # E*C weight traffic is DMA'd from HBM exactly once.
    grid = (grid_c, grid_b)

    fp = footprint(tm, tn)
    vmem_limit = max(int(fp * 1.3) + (1 << 20), 16 * 1024 * 1024)

    cost = pl.CostEstimate(
        flops=2 * B * E * C,
        transcendentals=C * grid_b,                       # in-kernel rsqrt
        bytes_accessed=int(grid_c * B * E * x_isz         # x re-read per C tile
                           + E * C * w_isz                # weights read once
                           + B * C * 4),                  # output written once
    )

    out = pl.pallas_call(
        functools.partial(_margin_linear_kernel, s=float(s)),
        out_shape=jax.ShapeDtypeStruct((B, C), jnp.float32),
        grid_spec=pltpu.PrefetchScalarGridSpec(
            num_scalar_prefetch=0,
            grid=grid,
            in_specs=[
                pl.BlockSpec((tm, E), lambda j, i: (i, 0)),   # embeddings tile
                pl.BlockSpec((E, tn), lambda j, i: (0, j)),   # kernel cols tile
            ],
            out_specs=pl.BlockSpec((tm, tn), lambda j, i: (i, j)),
        ),
        compiler_params=pltpu.CompilerParams(
            # Both axes independent; shards across v7x's 2 TensorCores,
            # no-op on v5e/v6e.
            dimension_semantics=("parallel", "parallel"),
            vmem_limit_bytes=vmem_limit,
        ),
        cost_estimate=cost,
    )(x, w)

    return out


def margin_linear_ref(embeddings, kernel, *, s=64.0):
    # Pure-JAX reference of the PyTorch forward.
    col_norm = jnp.sqrt(jnp.sum(kernel * kernel, axis=0, keepdims=True))
    kernel_norm = kernel / col_norm
    cos_theta = embeddings @ kernel_norm
    cos_theta = jnp.clip(cos_theta, -1.0, 1.0)
    return cos_theta * s


if __name__ == "__main__":
    # Small shapes consistent with the module's forward:
    # embedding_size -> 32, classnum -> 256, batch -> 8
    B, E, C = 8, 32, 256
    s = 64.0  # m / cos_m / sin_m / threshold are unused in this forward path

    key = jax.random.PRNGKey(0)
    k_emb, k_w = jax.random.split(key)

    embeddings = jax.random.normal(k_emb, (B, E), dtype=jnp.float32)
    # Deterministic init mirroring kernel.data.uniform_(-1, 1); the
    # renorm_(...).mul_(...) step only rescales columns and is cancelled by
    # the in-forward l2_norm, so plain uniform init is semantically equivalent.
    kernel = jax.random.uniform(k_w, (E, C), dtype=jnp.float32,
                                minval=-1.0, maxval=1.0)

    out = margin_linear(embeddings, kernel, s=s)
    out = jax.block_until_ready(out)

    ref = margin_linear_ref(embeddings, kernel, s=s)
    assert out.shape == (B, C)
    assert jnp.allclose(out, ref, atol=1e-3, rtol=1e-3)

    print("KERNEL_OK")
</pallas_src>

<mosaic_0001>
module attributes {stable_mosaic.version = 11 : i64} {
  func.func @_margin_linear_kernel(%arg0: i32, %arg1: i32, %arg2: memref<8x32xf32, #tpu.memory_space<vmem>>, %arg3: memref<32x256xf32, #tpu.memory_space<vmem>>, %arg4: memref<8x256xf32, #tpu.memory_space<vmem>>) attributes {dimension_semantics = [#tpu.dimension_semantics<parallel>, #tpu.dimension_semantics<parallel>], iteration_bounds = array<i64: 1, 1>, scalar_prefetch = 0 : i64, scratch_operands = 0 : i64, tpu.core_type = #tpu.core_type<tc>, window_params = [{transform_indices = @transform_0, window_bounds = array<i64: 8, 32>}, {transform_indices = @transform_1, window_bounds = array<i64: 32, 256>}, {transform_indices = @transform_2, window_bounds = array<i64: 8, 256>}]} {
    %c0 = arith.constant 0 : index
    %c0_0 = arith.constant 0 : index
    %0 = vector.load %arg3[%c0, %c0_0] : memref<32x256xf32, #tpu.memory_space<vmem>>, vector<32x256xf32>
    %1 = arith.mulf %0, %0 : vector<32x256xf32>
    %cst = arith.constant dense<0.000000e+00> : vector<256xf32>
    %2 = vector.multi_reduction <add>, %1, %cst [0] : vector<32x256xf32> to vector<256xf32>
    %3 = vector.shape_cast %2 : vector<256xf32> to vector<1x256xf32>
    %4 = math.rsqrt %3 : vector<1x256xf32>
    %c0_1 = arith.constant 0 : index
    %c0_2 = arith.constant 0 : index
    %5 = vector.load %arg2[%c0_1, %c0_2] : memref<8x32xf32, #tpu.memory_space<vmem>>, vector<8x32xf32>
    %cst_3 = arith.constant dense<0.000000e+00> : vector<8x256xf32>
    %6 = tpu.matmul %5, %0, %cst_3 {dimension_numbers = #tpu.dot_dimension_numbers<[1], [0], [0], [1], [0, 0, 1, 1], [], []>} : vector<8x32xf32>, vector<32x256xf32>, vector<8x256xf32> -> vector<8x256xf32>
    %7 = vector.broadcast %4 : vector<1x256xf32> to vector<8x256xf32>
    %8 = arith.mulf %6, %7 : vector<8x256xf32>
    %cst_4 = arith.constant -1.000000e+00 : f32
    %cst_5 = arith.constant 1.000000e+00 : f32
    %9 = vector.broadcast %cst_4 : f32 to vector<8x256xf32>
    %10 = arith.maximumf %9, %8 : vector<8x256xf32>
    %11 = vector.broadcast %cst_5 : f32 to vector<8x256xf32>
    %12 = arith.minimumf %11, %10 : vector<8x256xf32>
    %cst_6 = arith.constant 6.400000e+01 : f32
    %13 = vector.broadcast %cst_6 : f32 to vector<8x256xf32>
    %14 = arith.mulf %12, %13 : vector<8x256xf32>
    %c0_7 = arith.constant 0 : index
    %c0_8 = arith.constant 0 : index
    %15 = vector.load %arg4[%c0_7, %c0_8] : memref<8x256xf32, #tpu.memory_space<vmem>>, vector<8x256xf32>
    tpu.vector_store %arg4[%c0_7, %c0_8], %14 {strides = array<i32>} : memref<8x256xf32, #tpu.memory_space<vmem>>, vector<8x256xf32>,
    return
  }
  func.func @transform_0(%arg0: i32, %arg1: i32) -> (i32, i32) {
    %c0_i32 = arith.constant 0 : i32
    %c0_i32_0 = arith.constant 0 : i32
    return %arg1, %c0_i32 : i32, i32
  }
  func.func @transform_1(%arg0: i32, %arg1: i32) -> (i32, i32) {
    %c0_i32 = arith.constant 0 : i32
    %c0_i32_0 = arith.constant 0 : i32
    return %c0_i32, %arg0 : i32, i32
  }
  func.func @transform_2(%arg0: i32, %arg1: i32) -> (i32, i32) {
    %c0_i32 = arith.constant 0 : i32
    return %arg1, %arg0 : i32, i32
  }
}

</mosaic_0001>

<bundles_post_ra>
// kernel: tpu_custom_call.1
= control target key start
LH: loop header
LB: loop body
LE: loop exit
PB: predicated region body
PF: predicated region fallthrough
CT: control target
= control target key end

     0   :  { %7 = vsyncpa [#allocation3], 0  ;;  %s289_s0 = inlined_call_operand.hbm [shape: f32[8,32], index: 0, kind: input, shape index: {}]   ;;  %s290_s1 = inlined_call_operand.hbm [shape: f32[32,256], index: 1, kind: input, shape index: {}]   ;;  %s291_s2 = inlined_call_operand.hbm [shape: f32[8,256], index: 2, kind: output, shape index: {}]  }
   0x1   :  { %8 = vsyncpa [#allocation6], 0 }
   0x2   :  { %9 = vsyncpa [#allocation4], 0  ;;  %s15_s11 = sshll.u32 %s289_s0, 4  ;;  %s260_s12 = smov [#allocation2]   ;;  %s16_s11 = int_to_ptr.hbm [resolvable:$true] %s15_s11 }
   0x3   :  { %s17_s13 = sshll.u32 %s260_s12, 4  ;;  %s25_s16 = sshll.u32 %s290_s1, 4  ;;  %s18_s13 = int_to_ptr.vmem [resolvable:$true] %s17_s13  ;;  %s26_s16 = int_to_ptr.hbm [resolvable:$true] %s25_s16 }
   0x4   :  { %20 = dma.hbm_to_vmem [thread:$0]  %s16_s11, 128, %s18_s13, [#allocation3]  }
   0x5   :  { %s261_s17 = smov [#allocation5]   ;;  %s262_s19 = smov 256  }
   0x6   :  { %s27_s18 = sshll.u32 %s261_s17, 4  ;;  %s263_s20 = smov 16   ;;  %s28_s18 = int_to_ptr.vmem [resolvable:$true] %s27_s18 }
   0x7   :  { %33 = dma.hbm_to_vmem [thread:$0]  %s26_s16, 1024, %s28_s18, [#allocation6], %s262_s19, %s262_s19, %s263_s20  }
   0x8   :  { %254 = dma.done.wait [#allocation3], 128  }
   0x9   :  { %255 = vsyncadd [#allocation3], 4294967168 }
   0xa   :  { %256 = dma.done.wait [#allocation6], 1024  }
   0xb   :  { %257 = vsyncadd [#allocation6], 4294966272  ;;  %v48_v0 = vld [vmem:[#allocation5 + $0x30] sm:$0xff]  ;;  %v49_v1 = vld [vmem:[#allocation5 + $0x38] sm:$0xff]  ;;  %vm97_vm0 = vcmask 261120   ;;  %s264_s0 = smov [#allocation7]  }
   0xc   :  { %v46_v2 = vld [vmem:[#allocation5 + $0x20] sm:$0xff]  ;;  %113 = vmatpush.msra.mxu0 %v48_v0  ;;  %133 = vmatpush.msra.mxu1 %v49_v1  ;;  %v47_v3 = vld [vmem:[#allocation5 + $0x28] sm:$0xff]  ;;  %v44_v4 = vld [vmem:[#allocation5 + $0x10] sm:$0xff]  ;;  %v56_v14 = vmul.f32 %v48_v0, %v48_v0  ;;  %v57_v15 = vmul.f32 %v49_v1, %v49_v1  ;;  %s156_s1 = sshll.u32 %s264_s0, 4  ;;  %s158_s23 = sshll.u32 %s291_s2, 4  ;;  %s157_s1 = int_to_ptr.vmem [resolvable:$true] %s156_s1  ;;  %s159_s23 = int_to_ptr.hbm [resolvable:$true] %s158_s23 }
   0xd   :  { %v45_v5 = vld [vmem:[#allocation5 + $0x18] sm:$0xff]  ;;  %v54_v6 = vmul.f32 %v46_v2, %v46_v2  ;;  %v52_v7 = vmul.f32 %v44_v4, %v44_v4  ;;  %v42_v9 = vld [vmem:[#allocation5] sm:$0xff]  ;;  %v43_v10 = vld [vmem:[#allocation5 + $0x8] sm:$0xff]  ;;  %v55_v11 = vmul.f32 %v47_v3, %v47_v3 }
   0xe   :  { %v53_v8 = vmul.f32 %v45_v5, %v45_v5  ;;  %114 = vmatpush.msra.mxu0 %v46_v2  ;;  %134 = vmatpush.msra.mxu1 %v47_v3  ;;  %v50_v12 = vmul.f32 %v42_v9, %v42_v9  ;;  %v51_v13 = vmul.f32 %v43_v10, %v43_v10  ;;  %v96_v18 = vld [vmem:[#allocation2] sm:$0xff] }
  0x10   :  { %115 = vmatpush.msra.mxu0 %v44_v4  ;;  %135 = vmatpush.msra.mxu1 %v45_v5  ;;  %v58_v16 = vadd.f32 %v52_v7, %v50_v12  ;;  %v67_v17 = vadd.f32 %v53_v8, %v51_v13 }
  0x12   :  { %v59_v19 = vadd.f32 %v58_v16, %v54_v6  ;;  %116 = vmatpush.msra.mxu0 %v42_v9  ;;  %v68_v20 = vadd.f32 %v67_v17, %v55_v11  ;;  %136 = vmatpush.msra.mxu1 %v43_v10 }
  0x13   :  { %169 = vmatmul.msk.f32.vlgmr.msra.gmra.mxu0 %vm97_vm0, %v96_v18  ;;  %170 = vmatmul.msk.f32.vlgmr.msra.gmra.mxu1 %vm97_vm0, %v96_v18 }
  0x14   :  { %v60_v21 = vadd.f32 %v59_v19, %v56_v14  ;;  %v69_v22 = vadd.f32 %v68_v20, %v57_v15 }
  0x16   :  { %v61_v23 = vrot.slane %v60_v21, 4  ;;  %v70_v24 = vrot.slane %v69_v22, 4 }
  0x18   :  { %v62_v25 = vadd.f32 %v61_v23, %v60_v21  ;;  %v71_v26 = vadd.f32 %v70_v24, %v69_v22 }
  0x1a   :  { %v63_v27 = vrot.slane %v62_v25, 2  ;;  %v72_v28 = vrot.slane %v71_v26, 2 }
  0x1c   :  { %v64_v29 = vadd.f32 %v63_v27, %v62_v25  ;;  %v73_v30 = vadd.f32 %v72_v28, %v71_v26 }
  0x1e   :  { %v65_v31 = vrot.slane %v64_v29, 1  ;;  %v74_v32 = vrot.slane %v73_v30, 1 }
  0x20   :  { %v66_v33 = vadd.f32 %v65_v31, %v64_v29  ;;  %v75_v34 = vadd.f32 %v74_v32, %v73_v30 }
  0x22   :  { %178 = vrsqrt.f32 %v66_v33  ;;  %vm82_vm1 = vweird.f32 %v66_v33  ;;  %vm92_vm3 = vweird.f32 %v75_v34 }
  0x23   :  { %180 = vrsqrt.f32 %v75_v34 }
  0x28   :  { %v179_v35 = vpop.eup %178 }
  0x29   :  { %v181_v36 = vpop.eup %180  ;;  %v77_v37 = vmul.f32 %v179_v35, %v66_v33  ;;  %vm83_vm2 = vweird.f32 %v179_v35 }
  0x2a   :  { %v87_v38 = vmul.f32 %v181_v36, %v75_v34  ;;  %vm93_vm4 = vweird.f32 %v181_v36  ;;  %vm84_vm5 = vmor %vm82_vm1, %vm83_vm2 }
  0x2b   :  { %v78_v39 = vmul.f32 %v179_v35, %v77_v37  ;;  %vm94_vm6 = vmor %vm92_vm3, %vm93_vm4 }
  0x2c   :  { %v88_v40 = vmul.f32 %v181_v36, %v87_v38 }
  0x2d   :  { %v79_v41 = vmul.f32 0.5, %v78_v39 }
  0x2e   :  { %v89_v42 = vmul.f32 0.5, %v88_v40 }
  0x2f   :  { %v80_v43 = vsub.f32 1.5, %v79_v41 }
  0x30   :  { %v90_v44 = vsub.f32 1.5, %v89_v42 }
  0x31   :  { %v81_v45 = vmul.f32 %v179_v35, %v80_v43 }
  0x32   :  { %v91_v46 = vmul.f32 %v181_v36, %v90_v44 }
  0x33   :  { %v85_v47 = vsel %vm84_vm5, %v179_v35, %v81_v45 }
  0x34   :  { %v95_v48 = vsel %vm94_vm6, %v181_v36, %v91_v46 }
  0x90   :  { %v118_v49 = vpop.f32.mrf.mxu0  ;;  %v138_v50 = vpop.f32.mrf.mxu1 }
  0x91   :  { %v141_v51 = vmul.f32 %v118_v49, %v85_v47  ;;  %v142_v52 = vmul.f32 %v138_v50, %v95_v48 }
  0x93   :  { %v171_v53 = vclamps-f32 %v141_v51, 1.0  ;;  %v172_v54 = vclamps-f32 %v142_v52, 1.0 }
  0x95   :  { %v147_v55 = vmul.f32 64.0, %v171_v53  ;;  %v148_v56 = vmul.f32 64.0, %v172_v54 }
  0x97   :  { %149 = vst [vmem:[#allocation7] sm:$0xff] %v147_v55 }
  0x98   :  { %150 = vst [vmem:[#allocation7 + $0x8] sm:$0xff] %v148_v56 }
  0x99   :  { %161 = dma.vmem_to_hbm [thread:$0]  %s157_s1, 256, %s159_s23, [#allocation4]  }
  0x9a   :  { %258 = dma.done.wait [#allocation4], 256  }
  0x9b   :  { %259 = vsyncadd [#allocation4], 4294967040 }
  0x9c   :  { %166 = vsyncpa [#allocation3], 1 }
  0x9d   :  { %167 = vsyncpa [#allocation6], 1 }
  0x9e   :  { %168 = vsyncpa [#allocation4], 1 }

</bundles_post_ra>
